<compile_context>
chip_gen: v7x
topology: tpu7x:2x2x1
jax: 0.10.0
libtpu: 0.0.40
codegen_flags: <defaults>
</compile_context>

<pallas_src>
import math

import jax
import jax.numpy as jnp
from jax.experimental import pallas as pl
from jax.experimental.pallas import tpu as pltpu

_LN2 = math.log(2.0)


def _shifted_softplus_kernel(x_ref, o_ref):
    x = x_ref[...]
    # Compute in f32 for accuracy (required on v5e; free under DMA on v6e/v7x).
    xf = x.astype(jnp.float32)
    y = jax.nn.softplus(xf) - jnp.float32(_LN2)
    o_ref[...] = y.astype(o_ref.dtype)


def shifted_softplus(x, *, target_tile_bytes=2 * 1024 * 1024):
    """Elementwise shifted-softplus over an arbitrary-shaped array."""
    orig_shape = x.shape
    dtype = x.dtype
    n = x.size
    if n == 0:
        return x

    # Pick a lane-dense column width (large multiple of 128) that divides n,
    # so no padding copy is needed.
    cols = None
    for c in (4096, 2048, 1024, 512, 256, 128):
        if n % c == 0:
            cols = c
            break

    x_flat = jnp.ravel(x)
    pad = 0
    if cols is None:
        # Ragged size: fall back to padding to a multiple of 128 lanes.
        # (Rare for activations; padded region is sliced off below.)
        cols = 128
        pad = (-n) % cols
        x_flat = jnp.concatenate([x_flat, jnp.zeros((pad,), dtype=dtype)])

    rows = (n + pad) // cols
    itemsize = jnp.dtype(dtype).itemsize

    # Block rows targeting ~2 MiB per block, rounded to a multiple of 8 sublanes.
    tile_rows = max(8, (target_tile_bytes // (cols * itemsize)) // 8 * 8)
    if tile_rows >= rows:
        tile_rows = rows                      # full-dim block is always legal
        grid = (1,)
    else:
        # Partial last block is safe for an elementwise kernel:
        # OOB reads are padded, OOB writes are dropped.
        grid = (pl.cdiv(rows, tile_rows),)

    x2d = x_flat.reshape(rows, cols)

    out2d = pl.pallas_call(
        _shifted_softplus_kernel,
        out_shape=jax.ShapeDtypeStruct((rows, cols), dtype),
        grid=grid,
        in_specs=[pl.BlockSpec((tile_rows, cols), lambda i: (i, 0))],
        out_specs=pl.BlockSpec((tile_rows, cols), lambda i: (i, 0)),
        compiler_params=pltpu.CompilerParams(
            dimension_semantics=("parallel",)),
    )(x2d)

    out_flat = out2d.reshape(-1)
    if pad:
        out_flat = out_flat[:n]
    return out_flat.reshape(orig_shape)


def shifted_softplus_ref(x):
    xf = x.astype(jnp.float32)
    return (jax.nn.softplus(xf) - jnp.float32(_LN2)).astype(x.dtype)


if __name__ == "__main__":
    key = jax.random.PRNGKey(0)
    # NCHW input, matching typical conv activations the module would see.
    x = jax.random.normal(key, (2, 4, 16, 16), dtype=jnp.float32)

    out = shifted_softplus(x)
    out = jax.block_until_ready(out)

    ref = shifted_softplus_ref(x)
    assert out.shape == x.shape and out.dtype == x.dtype
    assert jnp.allclose(out, ref, atol=1e-6, rtol=1e-6)
    print("KERNEL_OK")
</pallas_src>

<mosaic_0001>
module attributes {stable_mosaic.version = 11 : i64} {
  func.func @_shifted_softplus_kernel(%arg0: i32, %arg1: memref<1x2048xf32, #tpu.memory_space<vmem>>, %arg2: memref<1x2048xf32, #tpu.memory_space<vmem>>) attributes {dimension_semantics = [#tpu.dimension_semantics<parallel>], iteration_bounds = array<i64: 1>, scalar_prefetch = 0 : i64, scratch_operands = 0 : i64, tpu.core_type = #tpu.core_type<tc>, window_params = [{transform_indices = @transform_0, window_bounds = array<i64: 1, 2048>}, {transform_indices = @transform_1, window_bounds = array<i64: 1, 2048>}]} {
    %c0 = arith.constant 0 : index
    %c0_0 = arith.constant 0 : index
    %0 = vector.load %arg1[%c0, %c0_0] : memref<1x2048xf32, #tpu.memory_space<vmem>>, vector<1x2048xf32>
    %cst = arith.constant 0.000000e+00 : f32
    %1 = vector.broadcast %cst : f32 to vector<1x2048xf32>
    %2 = arith.maximumf %0, %1 : vector<1x2048xf32>
    %3 = vector.broadcast %cst : f32 to vector<1x2048xf32>
    %4 = arith.subf %0, %3 : vector<1x2048xf32>
    %5 = arith.cmpf one, %4, %4 : vector<1x2048xf32>
    %6 = vector.broadcast %cst : f32 to vector<1x2048xf32>
    %7 = arith.addf %0, %6 : vector<1x2048xf32>
    %8 = math.absf %4 : vector<1x2048xf32>
    %cst_1 = arith.constant 0.000000e+00 : f32
    %9 = vector.broadcast %cst_1 : f32 to vector<1x2048xf32>
    %10 = arith.subf %9, %8 : vector<1x2048xf32>
    %11 = math.exp %10 : vector<1x2048xf32>
    %12 = math.log1p %11 : vector<1x2048xf32>
    %13 = arith.addf %2, %12 : vector<1x2048xf32>
    %14 = arith.select %5, %7, %13 : vector<1x2048xi1>, vector<1x2048xf32>
    %cst_2 = arith.constant 0.693147182 : f32
    %15 = vector.broadcast %cst_2 : f32 to vector<1x2048xf32>
    %16 = arith.subf %14, %15 : vector<1x2048xf32>
    %c0_3 = arith.constant 0 : index
    %c0_4 = arith.constant 0 : index
    %17 = vector.load %arg2[%c0_3, %c0_4] : memref<1x2048xf32, #tpu.memory_space<vmem>>, vector<1x2048xf32>
    tpu.vector_store %arg2[%c0_3, %c0_4], %16 {strides = array<i32>} : memref<1x2048xf32, #tpu.memory_space<vmem>>, vector<1x2048xf32>,
    return
  }
  func.func @transform_0(%arg0: i32) -> (i32, i32) {
    %c0_i32 = arith.constant 0 : i32
    %c0_i32_0 = arith.constant 0 : i32
    return %arg0, %c0_i32 : i32, i32
  }
  func.func @transform_1(%arg0: i32) -> (i32, i32) {
    %c0_i32 = arith.constant 0 : i32
    %c0_i32_0 = arith.constant 0 : i32
    return %arg0, %c0_i32 : i32, i32
  }
}

</mosaic_0001>

<bundles_post_ra>
// kernel: tpu_custom_call.1
= control target key start
LH: loop header
LB: loop body
LE: loop exit
PB: predicated region body
PF: predicated region fallthrough
CT: control target
= control target key end

     0   :  { %6 = vsyncpa [#allocation3], 0  ;;  %s174_s0 = inlined_call_operand.hbm [shape: f32[1,2048], index: 0, kind: input, shape index: {}]   ;;  %s175_s1 = inlined_call_operand.hbm [shape: f32[1,2048], index: 1, kind: output, shape index: {}]  }
   0x1   :  { %7 = vsyncpa [#allocation4], 0  ;;  %s138_s6 = smov [#allocation2]   ;;  %s90_s10 = scalar_lea.hbm %s174_s0, 256 }
   0x2   :  { %s14_s7 = sshll.u32 %s138_s6, 4  ;;  %p91_p0 = scmp.ne.s32.totalorder %s174_s0, %s90_s10  ;;  %s15_s7 = int_to_ptr.vmem [resolvable:$true] %s14_s7 }
   0x3   :  { %p94_p1 = scmp.lt.u32.totalorder %s90_s10, %s174_s0 }
   0x5   :  { %p96_p2 = pnand %p94_p1, %p91_p0 }
   0x7   :  { %99 = shalt.err (!%p96_p2)
}
   0x8   :  { %s100_s15 = scalar_lea.vmem %s15_s7, 256  ;;  %p105_p4 = scmp.lt.s32.totalorder %s15_s7, %s15_s7 }
   0x9   :  { %p101_p3 = scmp.ne.s32.totalorder %s15_s7, %s100_s15  ;;  %p106_p5 = scmp.lt.s32.totalorder %s100_s15, %s100_s15 }
   0xb   :  { %p107_p6 = por %p106_p5, %p105_p4 }
   0xd   :  { %p108_p7 = pnand %p107_p6, %p101_p3 }
   0xf   :  { %111 = shalt.err (!%p108_p7)
}
  0x10   :  { %17 = dma.hbm_to_vmem [thread:$0]  %s174_s0, 256, %s15_s7, [#allocation3]  }
  0x11   :  { %134 = dma.done.wait [#allocation3], 256  }
  0x12   :  { %135 = vsyncadd [#allocation3], 4294967040  ;;  %v21_v0 = vld [vmem:[#allocation2] sm:$0xff]  ;;  %v22_v1 = vld [vmem:[#allocation2 + $0x8] sm:$0xff]  ;;  %s139_s0 = smov [#allocation5]  }
  0x13   :  { %v29_v2 = vand.u32 2147483647, %v21_v0  ;;  %v30_v3 = vand.u32 2147483647, %v22_v1  ;;  %v23_v20 = vmax.f32 %v21_v0, 0.0  ;;  %v24_v24 = vmax.f32 %v22_v1, 0.0 }
  0x14   :  { %vm25_vm2 = vcmp.ne.f32.partialorder %v21_v0, %v21_v0  ;;  %vm26_vm3 = vcmp.ne.f32.partialorder %v22_v1, %v22_v1  ;;  %s69_s18 = sshll.u32 %s139_s0, 4  ;;  %s70_s18 = int_to_ptr.vmem [resolvable:$true] %s69_s18 }
  0x15   :  { %v31_v4 = vsub.f32 0.0, %v29_v2  ;;  %v32_v5 = vsub.f32 0.0, %v30_v3  ;;  %s112_s19 = scalar_lea.vmem %s70_s18, 256  ;;  %p117_p9 = scmp.lt.s32.totalorder %s70_s18, %s70_s18 }
  0x16   :  { %p113_p8 = scmp.ne.s32.totalorder %s70_s18, %s112_s19  ;;  %p118_p10 = scmp.lt.s32.totalorder %s112_s19, %s112_s19 }
  0x17   :  { %v33_v6 = vmul.f32 1.442695, %v31_v4  ;;  %v35_v7 = vmul.f32 1.442695, %v32_v5 }
  0x18   :  { %p119_p11 = por %p118_p10, %p117_p9 }
  0x19   :  { %82 = vpow2.f32 %v33_v6 }
  0x1a   :  { %84 = vpow2.f32 %v35_v7  ;;  %p120_p12 = pnand %p119_p11, %p113_p8 }
  0x23   :  { %v83_v8 = vpop.eup %82 }
  0x24   :  { %v85_v9 = vpop.eup %84  ;;  %v37_v10 = vadd.f32 1.0, %v83_v8  ;;  %v40_v12 = vmul.f32 -0.5, %v83_v8  ;;  %v43_v15 = vand.u32 2147483647, %v83_v8 }
  0x25   :  { %v46_v11 = vadd.f32 1.0, %v85_v9  ;;  %v49_v13 = vmul.f32 -0.5, %v85_v9  ;;  %v52_v17 = vand.u32 2147483647, %v85_v9 }
  0x26   :  { %86 = vlog2.f32 %v37_v10  ;;  %v41_v14 = vadd.f32 1.0, %v40_v12  ;;  %vm44_vm0 = vcmp.lt.f32.partialorder %v43_v15, 0.0004427343 }
  0x27   :  { %88 = vlog2.f32 %v46_v11  ;;  %v50_v16 = vadd.f32 1.0, %v49_v13  ;;  %vm53_vm1 = vcmp.lt.f32.partialorder %v52_v17, 0.0004427343 }
  0x28   :  { %v42_v18 = vmul.f32 %v83_v8, %v41_v14 }
  0x29   :  { %v51_v21 = vmul.f32 %v85_v9, %v50_v16 }
  0x30   :  { %v87_v19 = vpop.eup %86 }
  0x31   :  { %v89_v22 = vpop.eup %88  ;;  %v39_v23 = vmul.f32 0.6931472, %v87_v19 }
  0x32   :  { %v48_v25 = vmul.f32 0.6931472, %v89_v22 }
  0x33   :  { %v45_v26 = vsel %vm44_vm0, %v42_v18, %v39_v23 }
  0x34   :  { %v55_v27 = vadd.f32 %v45_v26, %v23_v20  ;;  %v54_v28 = vsel %vm53_vm1, %v51_v21, %v48_v25 }
  0x35   :  { %v56_v29 = vadd.f32 %v54_v28, %v24_v24 }
  0x36   :  { %v57_v30 = vsel %vm25_vm2, %v21_v0, %v55_v27 }
  0x37   :  { %v78_v31 = vadd.f32 -0.6931472, %v57_v30  ;;  %v58_v32 = vsel %vm26_vm3, %v22_v1, %v56_v29 }
  0x38   :  { %v79_v33 = vadd.f32 -0.6931472, %v58_v32 }
  0x39   :  { %61 = vst [vmem:[#allocation5] sm:$0xff] %v78_v31 }
  0x3a   :  { %62 = vst [vmem:[#allocation5 + $0x8] sm:$0xff] %v79_v33 }
  0x3b   :  { %123 = shalt.err (!%p120_p12)
}
  0x3c   :  { %s124_s22 = scalar_lea.hbm %s175_s1, 256 }
  0x3d   :  { %p125_p13 = scmp.ne.s32.totalorder %s175_s1, %s124_s22  ;;  %p128_p0 = scmp.lt.u32.totalorder %s124_s22, %s175_s1 }
  0x3f   :  { %p130_p1 = pnand %p128_p0, %p125_p13 }
  0x41   :  { %133 = shalt.err (!%p130_p1)
}
  0x42   :  { %72 = dma.vmem_to_hbm [thread:$0]  %s70_s18, 256, %s175_s1, [#allocation4]  }
  0x43   :  { %136 = dma.done.wait [#allocation4], 256  }
  0x44   :  { %137 = vsyncadd [#allocation4], 4294967040 }
  0x45   :  { %76 = vsyncpa [#allocation3], 1 }
  0x46   :  { %77 = vsyncpa [#allocation4], 1 }

</bundles_post_ra>
